<compile_context>
chip_gen: v7x
topology: tpu7x:2x2x1
jax: 0.10.0
libtpu: 0.0.40
codegen_flags: <defaults>
</compile_context>

<pallas_src>
import math

import jax
import jax.numpy as jnp
from jax.experimental import pallas as pl
from jax.experimental.pallas import tpu as pltpu

_RMS_EPS = 1e-6       # TODO(synk): must match the reference model's rms_norm_eps.


def _vmem_cap_bytes():
    try:
        return int(pltpu.get_tpu_info().vmem_capacity_bytes)
    except Exception:
        return 64 * 1024 * 1024


_VMEM_CAP = _vmem_cap_bytes()
# Leave headroom for compiler-internal scratch / DMA descriptors (important on v7x: 64 MiB).
_VMEM_LIMIT = min((_VMEM_CAP * 3) // 4, 112 * 1024 * 1024)
_SMALL_VMEM = _VMEM_CAP <= 64 * 1024 * 1024          # v7x-class chip
_FFN_TM = 128 if _SMALL_VMEM else 256
_MM_TM = 256 if _SMALL_VMEM else 512


# ----------------------------------------------------------------------------
# tiling helpers (respect the (8, 128) block constraints)
# ----------------------------------------------------------------------------
def _tile_sub(dim, target):
    """Tile for a second-to-last (sublane) dim: divisor of dim, multiple of 8, or full dim."""
    if dim <= target:
        return dim
    t = (target // 8) * 8
    while t >= 8:
        if dim % t == 0:
            return t
        t -= 8
    return dim


def _tile_lane(dim, target):
    """Tile for a last (lane) dim: divisor of dim, multiple of 128, or full dim."""
    if dim <= target:
        return dim
    t = (target // 128) * 128
    while t >= 128:
        if dim % t == 0:
            return t
        t -= 128
    return dim


def _pad_rows(x, mult=8):
    """Pad the leading (row) dim up to a multiple of `mult`. Returns (padded, orig_rows)."""
    m = x.shape[0]
    pad = (-m) % mult
    if pad:
        x = jnp.pad(x, ((0, pad),) + ((0, 0),) * (x.ndim - 1))
    return x, m


# ----------------------------------------------------------------------------
# Pallas kernels
# ----------------------------------------------------------------------------
def pallas_matmul(x, w, *, tm=None, tn=256, tk=1024, out_dtype=None):
    """x: (M, K) @ w: (K, N) -> (M, N). 3-D tiled grid with f32 VMEM accumulator."""
    x, M0 = _pad_rows(x)
    M, K = x.shape
    K2, N = w.shape
    assert K == K2
    out_dtype = out_dtype or x.dtype
    tm = _tile_sub(M, tm or _MM_TM)
    tn = _tile_lane(N, tn)
    tk = _tile_lane(K, tk)
    nk = K // tk

    def kernel(x_ref, w_ref, o_ref, acc_ref):
        @pl.when(pl.program_id(2) == 0)
        def _():
            acc_ref[...] = jnp.zeros(acc_ref.shape, acc_ref.dtype)

        acc_ref[...] += jnp.dot(
            x_ref[...].astype(w_ref.dtype), w_ref[...],
            preferred_element_type=jnp.float32)

        @pl.when(pl.program_id(2) == nk - 1)
        def _():
            o_ref[...] = acc_ref[...].astype(o_ref.dtype)

    out = pl.pallas_call(
        kernel,
        out_shape=jax.ShapeDtypeStruct((M, N), out_dtype),
        grid=(M // tm, N // tn, nk),
        in_specs=[
            pl.BlockSpec((tm, tk), lambda i, j, k: (i, k)),
            pl.BlockSpec((tk, tn), lambda i, j, k: (k, j)),
        ],
        out_specs=pl.BlockSpec((tm, tn), lambda i, j, k: (i, j)),
        scratch_shapes=[pltpu.VMEM((tm, tn), jnp.float32)],
        compiler_params=pltpu.CompilerParams(
            dimension_semantics=("parallel", "parallel", "arbitrary"),
            vmem_limit_bytes=_VMEM_LIMIT),
    )(x, w)
    return out[:M0] if M0 != M else out


def pallas_norm_matmul(x, g, w, *, tm=None, tn=512, out_dtype=None):
    """Fused RMSNorm + matmul: (RMSNorm(x)*g) @ w.  x: (M, K), g: (K,), w: (K, N).
    The normalized activations are computed once per row tile (j == 0) into VMEM scratch
    and reused for every N tile."""
    x, M0 = _pad_rows(x)
    M, K = x.shape
    K2, N = w.shape
    assert K == K2
    out_dtype = out_dtype or x.dtype
    tm = _tile_sub(M, tm or _MM_TM)
    tn = _tile_lane(N, tn)
    wdt = w.dtype
    g2 = g.reshape(1, K)

    def kernel(x_ref, g_ref, w_ref, o_ref, xn_ref):
        @pl.when(pl.program_id(1) == 0)
        def _():
            xf = x_ref[...].astype(jnp.float32)
            inv = jax.lax.rsqrt(jnp.mean(xf * xf, axis=-1, keepdims=True) + _RMS_EPS)
            xn_ref[...] = (xf * inv * g_ref[...].astype(jnp.float32)).astype(xn_ref.dtype)

        o_ref[...] = jnp.dot(xn_ref[...], w_ref[...],
                             preferred_element_type=jnp.float32).astype(o_ref.dtype)

    out = pl.pallas_call(
        kernel,
        out_shape=jax.ShapeDtypeStruct((M, N), out_dtype),
        grid=(M // tm, N // tn),
        in_specs=[
            pl.BlockSpec((tm, K), lambda i, j: (i, 0)),
            pl.BlockSpec((1, K), lambda i, j: (0, 0)),
            pl.BlockSpec((K, tn), lambda i, j: (0, j)),
        ],
        out_specs=pl.BlockSpec((tm, tn), lambda i, j: (i, j)),
        scratch_shapes=[pltpu.VMEM((tm, K), wdt)],     # normalized rows, reused across j
        compiler_params=pltpu.CompilerParams(
            dimension_semantics=("parallel", "arbitrary"),
            vmem_limit_bytes=_VMEM_LIMIT),
    )(x, g2, w)
    return out[:M0] if M0 != M else out


def pallas_ffn(x, ln_g, wg, wu, wd, *, pre_add=None, add_residual=False,
               steer=None, emit_resid=False, tm=None, ti=256, out_dtype=None):
    """Fused [resid = x (+ pre_add)] -> RMSNorm(resid)*ln_g -> SwiGLU FFN (I-tiled,
    accumulated down-projection) -> [+ resid].  x: (M, D).
    Optional outputs (fused into the finalize): `steered` = out + steer (broadcast (1, D)),
    `resid_out` = x + pre_add (the intermediate residual, for save_internal_decodings)."""
    x, M0 = _pad_rows(x)
    if pre_add is not None:
        pre_add, _ = _pad_rows(pre_add)
    M, D = x.shape
    D2, I = wg.shape
    assert D == D2 and wu.shape == (D, I) and wd.shape == (I, D)
    out_dtype = out_dtype or x.dtype
    tm = _tile_sub(M, tm or _FFN_TM)
    ti = _tile_lane(I, ti)
    ni = I // ti
    has_pre = pre_add is not None
    has_steer = steer is not None
    wdt = wg.dtype
    n_in = 5 + int(has_pre) + int(has_steer)
    n_out = 1 + int(has_steer) + int(emit_resid)

    def kernel(*refs):
        in_refs = refs[:n_in]
        out_refs = refs[n_in:n_in + n_out]
        resid_ref, xn_ref, acc_ref = refs[n_in + n_out:]
        x_ref, g_ref, wg_ref, wu_ref, wd_ref = in_refs[:5]
        idx = 5
        pre_ref = steer_ref = None
        if has_pre:
            pre_ref = in_refs[idx]; idx += 1
        if has_steer:
            steer_ref = in_refs[idx]; idx += 1
        o_ref = out_refs[0]
        oi = 1
        steered_ref = resid_out_ref = None
        if has_steer:
            steered_ref = out_refs[oi]; oi += 1
        if emit_resid:
            resid_out_ref = out_refs[oi]

        l = pl.program_id(1)

        @pl.when(l == 0)
        def _():
            xf = x_ref[...].astype(jnp.float32)
            if has_pre:
                xf = xf + pre_ref[...].astype(jnp.float32)
            resid_ref[...] = xf
            inv = jax.lax.rsqrt(jnp.mean(xf * xf, axis=-1, keepdims=True) + _RMS_EPS)
            xn_ref[...] = (xf * inv * g_ref[...].astype(jnp.float32)).astype(xn_ref.dtype)
            acc_ref[...] = jnp.zeros(acc_ref.shape, acc_ref.dtype)

        xn = xn_ref[...]
        g = jnp.dot(xn, wg_ref[...], preferred_element_type=jnp.float32)
        u = jnp.dot(xn, wu_ref[...], preferred_element_type=jnp.float32)
        h = (g * jax.nn.sigmoid(g)) * u                       # SiLU(g) * u
        acc_ref[...] += jnp.dot(h.astype(wd_ref.dtype), wd_ref[...],
                                preferred_element_type=jnp.float32)

        @pl.when(l == ni - 1)
        def _():
            out = acc_ref[...]
            if add_residual:
                out = out + resid_ref[...]
            o_ref[...] = out.astype(o_ref.dtype)
            if has_steer:
                steered_ref[...] = (out + steer_ref[...].astype(jnp.float32)
                                    ).astype(steered_ref.dtype)
            if emit_resid:
                resid_out_ref[...] = resid_ref[...].astype(resid_out_ref.dtype)

    in_specs = [
        pl.BlockSpec((tm, D), lambda i, l: (i, 0)),
        pl.BlockSpec((1, D), lambda i, l: (0, 0)),
        pl.BlockSpec((D, ti), lambda i, l: (0, l)),
        pl.BlockSpec((D, ti), lambda i, l: (0, l)),
        pl.BlockSpec((ti, D), lambda i, l: (l, 0)),
    ]
    args = [x, ln_g.reshape(1, D), wg, wu, wd]
    if has_pre:
        in_specs.append(pl.BlockSpec((tm, D), lambda i, l: (i, 0)))
        args.append(pre_add)
    if has_steer:
        in_specs.append(pl.BlockSpec((1, D), lambda i, l: (0, 0)))
        args.append(steer.reshape(1, D).astype(jnp.float32))

    out_block = pl.BlockSpec((tm, D), lambda i, l: (i, 0))
    out_shapes = tuple(jax.ShapeDtypeStruct((M, D), out_dtype) for _ in range(n_out))
    out_specs = tuple(out_block for _ in range(n_out))

    res = pl.pallas_call(
        kernel,
        out_shape=out_shapes,
        grid=(M // tm, ni),
        in_specs=in_specs,
        out_specs=out_specs,
        scratch_shapes=[
            pltpu.VMEM((tm, D), jnp.float32),   # resid (f32, reused for the output add)
            pltpu.VMEM((tm, D), wdt),           # RMSNorm'd activations in weight dtype
            pltpu.VMEM((tm, D), jnp.float32),   # down-projection accumulator
        ],
        compiler_params=pltpu.CompilerParams(
            dimension_semantics=("parallel", "arbitrary"),
            vmem_limit_bytes=_VMEM_LIMIT),
    )(*args)
    res = [r[:M0] if M0 != M else r for r in res]
    return res[0] if n_out == 1 else tuple(res)


def pallas_attention(qkv, B, S, H, hd, *, tq=256, tkv=256, out_dtype=jnp.bfloat16):
    """Causal flash attention reading heads directly from the fused qkv tensor.

    qkv: (B, S, 3*H*hd) with [q | k | v] segments, each head-major (head h occupies columns
    h*hd:(h+1)*hd of its segment). 1/sqrt(hd) is pre-folded into the q projection weights.
    Heads are packed 128/hd per grid step so the lane width is 128 (lane-dense DMA / stores).
    The query axis is tiled and fully-masked KV tiles are skipped.
    Returns (B, S, H*hd) in the same head-major layout (no transposes needed outside)."""
    D = H * hd
    assert qkv.shape == (B, S, 3 * D)
    G = 1
    if hd < 128:
        G = max(1, 128 // hd)
        while H % G != 0:
            G -= 1
    gw = G * hd                       # lane width per grid step
    # TODO(synk): handle head_dim/head-count combinations where gw is not a multiple of 128.
    assert gw % 128 == 0 or gw == 3 * D, "head packing must give a 128-aligned lane width"
    # TODO(synk): pad/tile S that is not a multiple of 8 (not needed for typical seq lengths).
    tq = _tile_sub(S, tq)
    tkv = _tile_sub(S, tkv)
    nq = S // tq
    nkv = S // tkv
    ncols = D // gw                   # number of head groups

    def kernel(q_ref, k_ref, v_ref, o_ref, m_ref, l_ref, acc_ref):
        qi = pl.program_id(2)
        kv = pl.program_id(3)
        q_row_end = (qi + 1) * tq - 1
        last_kv = q_row_end // tkv    # last KV tile that intersects this Q tile causally

        @pl.when(kv == 0)
        def _():
            m_ref[...] = jnp.full(m_ref.shape, -1e30, jnp.float32)
            l_ref[...] = jnp.zeros(l_ref.shape, jnp.float32)
            acc_ref[...] = jnp.zeros(acc_ref.shape, jnp.float32)

        @pl.when(kv <= last_kv)       # skip fully-causally-masked KV tiles
        def _():
            row = jax.lax.broadcasted_iota(jnp.int32, (tq, tkv), 0) + qi * tq
            col = jax.lax.broadcasted_iota(jnp.int32, (tq, tkv), 1) + kv * tkv
            mask = col <= row
            for j in range(G):        # per-head online softmax within the packed group
                lo, hi = j * hd, (j + 1) * hd
                s = jax.lax.dot_general(q_ref[:, lo:hi], k_ref[:, lo:hi],
                                        (((1,), (1,)), ((), ())),
                                        preferred_element_type=jnp.float32)
                s = jnp.where(mask, s, jnp.float32(-1e30))
                m_prev = m_ref[j]
                m_new = jnp.maximum(m_prev, jnp.max(s, axis=-1, keepdims=True))
                alpha = jnp.exp(m_prev - m_new)
                p = jnp.exp(s - m_new)
                l_ref[j] = alpha * l_ref[j] + jnp.sum(p, axis=-1, keepdims=True)
                acc_ref[j] = alpha * acc_ref[j] + jnp.dot(
                    p.astype(v_ref.dtype), v_ref[:, lo:hi],
                    preferred_element_type=jnp.float32)
                m_ref[j] = m_new

        @pl.when(kv == last_kv)
        def _():
            for j in range(G):
                inv = pl.reciprocal(l_ref[j], approx=True)
                o_ref[:, j * hd:(j + 1) * hd] = (acc_ref[j] * inv).astype(o_ref.dtype)

    q_spec = pl.BlockSpec((None, tq, gw), lambda b, g, qi, kv: (b, qi, g))
    k_spec = pl.BlockSpec((None, tkv, gw), lambda b, g, qi, kv: (b, kv, ncols + g))
    v_spec = pl.BlockSpec((None, tkv, gw), lambda b, g, qi, kv: (b, kv, 2 * ncols + g))
    o_spec = pl.BlockSpec((None, tq, gw), lambda b, g, qi, kv: (b, qi, g))

    return pl.pallas_call(
        kernel,
        out_shape=jax.ShapeDtypeStruct((B, S, D), out_dtype),
        grid=(B, ncols, nq, nkv),
        in_specs=[q_spec, k_spec, v_spec],
        out_specs=o_spec,
        scratch_shapes=[
            pltpu.VMEM((G, tq, 1), jnp.float32),    # running max (per packed head)
            pltpu.VMEM((G, tq, 1), jnp.float32),    # running denominator
            pltpu.VMEM((G, tq, hd), jnp.float32),   # output accumulator
        ],
        compiler_params=pltpu.CompilerParams(
            dimension_semantics=("parallel", "parallel", "parallel", "arbitrary"),
            vmem_limit_bytes=_VMEM_LIMIT),
    )(qkv, qkv, qkv)


# ----------------------------------------------------------------------------
# BlockOutputWrapper (Pallas-backed)
# ----------------------------------------------------------------------------
class BlockOutputWrapper:
    def __init__(self, params, cfg):
        self.p = params
        self.cfg = cfg
        # fused qkv projection weight; fold 1/sqrt(hd) into wq (exact: no rotary applied)
        scale = 1.0 / math.sqrt(cfg["hd"])
        self.wqkv = jnp.concatenate(
            [params["wq"] * scale, params["wk"], params["wv"]], axis=1)
        # mirrors of the PyTorch attributes
        self.attn_out_unembedded = None
        self.intermediate_resid_unembedded = None
        self.mlp_out_unembedded = None
        self.block_output_unembedded = None
        self.activations = None
        self.attn_activations = None   # == AttnWrapper(self.block.self_attn).activations
        self.add_activations = None
        self.add_activations_positions = None
        self.patch_activations = None
        self.patch_activations_pos = None
        self.has_patched = False
        self.save_internal_decodings = False
        self.only_add_to_first_token = False
        self.is_first_token = True

    # --- decoder block; all hot paths are Pallas kernels ---
    def _block(self, hidden, steer=None, emit_resid=False):
        """Returns (block_out, steered_block_out_or_None, resid_or_None)."""
        B, S, D = hidden.shape
        p, cfg = self.p, self.cfg
        x = hidden.reshape(B * S, D)
        # fused input RMSNorm + wide QKV projection (one pass over x, norm hoisted per row tile)
        qkv = pallas_norm_matmul(x, p["input_ln"], self.wqkv, out_dtype=jnp.bfloat16)
        # TODO(synk): rotary position embeddings of the HF block are unspecified here and omitted.
        o = pallas_attention(qkv.reshape(B, S, 3 * D), B, S, cfg["H"], cfg["hd"],
                             out_dtype=jnp.bfloat16)
        attn_out = pallas_matmul(o.reshape(B * S, D), p["wo"], out_dtype=hidden.dtype)
        self.attn_activations = attn_out.reshape(B, S, D)   # AttnWrapper saves attn output
        # fused: resid = x + attn_out; post-attn RMSNorm; SwiGLU FFN; + resid
        # (+ optional fused broadcast steering output and resid output)
        res = pallas_ffn(x, p["post_ln"], p["wg"], p["wu"], p["wd"],
                         pre_add=attn_out, add_residual=True,
                         steer=steer, emit_resid=emit_resid,
                         out_dtype=hidden.dtype)
        if steer is None and not emit_resid:
            out, steered, resid = res, None, None
        else:
            res = list(res)
            out = res.pop(0)
            steered = res.pop(0) if steer is not None else None
            resid = res.pop(0) if emit_resid else None
        out = out.reshape(B, S, D)
        if steered is not None:
            steered = steered.reshape(B, S, D)
        return out, steered, resid

    # --- wrapper logic (same control flow as the PyTorch module) ---
    def should_perturb_activations(self):
        if self.add_activations is None:
            return False
        if self.only_add_to_first_token:
            return self.is_first_token
        return True

    def should_patch_activations(self):
        if self.patch_activations is None or self.has_patched:
            return False
        return True

    def forward(self, hidden_states):
        B, S, D = hidden_states.shape
        M = B * S
        perturb = self.should_perturb_activations()
        broadcast_steer = perturb and self.add_activations_positions is None
        steer = (jnp.asarray(self.add_activations, jnp.float32).reshape(1, D)
                 if broadcast_steer else None)

        out0, steered, resid = self._block(hidden_states, steer=steer,
                                           emit_resid=self.save_internal_decodings)
        self.activations = out0
        output = (out0,)

        if perturb:
            if self.add_activations_positions is not None:
                # torch loops `output[0][0][pos] += ...`; batched into a single scatter
                pos = jnp.asarray(self.add_activations_positions)
                out_p = output[0].at[0, pos].add(self.add_activations)
                output = (out_p,) + output[1:]
            else:
                output = (steered,) + output[1:]   # steering fused into the FFN epilogue
                self.is_first_token = False

        if self.should_patch_activations():
            pos = jnp.asarray(self.patch_activations_pos)
            out_p = output[0].at[0, pos].set(self.patch_activations)
            output = (out_p,) + output[1:]

        if not self.save_internal_decodings:
            return output

        attn_output = self.attn_activations              # raw attention output (pre-residual)
        resid3d = resid.reshape(B, S, D)                 # hidden + attn_out (from the FFN kernel)
        # torch's `attn_output += args[0]` also mutates the saved attn activations (aliasing)
        self.attn_activations = resid3d
        mlp_flat = pallas_ffn(resid, self.p["post_ln"], self.p["wg"],
                              self.p["wu"], self.p["wd"],
                              out_dtype=hidden_states.dtype)
        # one fused RMSNorm + unembed over the four stacked activations
        # (the (D, V) unembed weight is streamed from HBM once, not 4x)
        stacked = jnp.concatenate(
            [output[0].reshape(M, D), attn_output.reshape(M, D), resid, mlp_flat], axis=0)
        logits = pallas_norm_matmul(stacked, self.p["final_ln"], self.p["w_unembed"],
                                    out_dtype=jnp.bfloat16)
        V = logits.shape[-1]
        logits = logits.reshape(4, B, S, V)
        self.block_output_unembedded = logits[0]
        self.attn_out_unembedded = logits[1]
        self.intermediate_resid_unembedded = logits[2]
        self.mlp_out_unembedded = logits[3]
        return output

    def add(self, activations, token_positions=None):
        self.add_activations = activations
        self.add_activations_positions = token_positions

    def patch(self, patch_activations, patch_activations_pos):
        self.patch_activations = patch_activations
        self.patch_activations_pos = patch_activations_pos

    def reset(self):
        self.add_activations = None
        self.add_activations_positions = None
        self.patch_activations = None
        self.patch_activations_pos = None
        self.activations = None
        self.attn_activations = None
        self.is_first_token = True
        self.has_patched = False


# ----------------------------------------------------------------------------
# Deterministic synthetic parameters (weights stored bf16; norm weights f32)
# ----------------------------------------------------------------------------
def init_params(key, D, I, V):
    ks = jax.random.split(key, 8)
    s = 0.02
    bf = jnp.bfloat16

    def w(k, shape):
        return (jax.random.normal(k, shape, jnp.float32) * s).astype(bf)

    return {
        "wq": w(ks[0], (D, D)), "wk": w(ks[1], (D, D)),
        "wv": w(ks[2], (D, D)), "wo": w(ks[3], (D, D)),
        "wg": w(ks[4], (D, I)), "wu": w(ks[5], (D, I)), "wd": w(ks[6], (I, D)),
        "w_unembed": w(ks[7], (D, V)),
        "input_ln": jnp.ones((D,), jnp.float32),
        "post_ln": jnp.ones((D,), jnp.float32),
        "final_ln": jnp.ones((D,), jnp.float32),
    }


if __name__ == "__main__":
    B, S, D, H, hd, I, V = 2, 8, 128, 4, 32, 256, 256
    cfg = {"D": D, "H": H, "hd": hd, "I": I, "V": V}

    key = jax.random.PRNGKey(0)
    kx, kp, ks = jax.random.split(key, 3)
    params = init_params(kp, D, I, V)

    wrapper = BlockOutputWrapper(params, cfg)
    wrapper.save_internal_decodings = True
    wrapper.add(jax.random.normal(ks, (D,), jnp.float32) * 0.1)   # steering vector

    hidden_states = jax.random.normal(kx, (B, S, D), jnp.float32)
    output = wrapper.forward(hidden_states)

    jax.block_until_ready(output[0])
    jax.block_until_ready(wrapper.activations)
    jax.block_until_ready(wrapper.attn_activations)
    jax.block_until_ready(wrapper.block_output_unembedded)
    jax.block_until_ready(wrapper.attn_out_unembedded)
    jax.block_until_ready(wrapper.intermediate_resid_unembedded)
    jax.block_until_ready(wrapper.mlp_out_unembedded)
    print("KERNEL_OK")
</pallas_src>

<mosaic_0001>
module attributes {stable_mosaic.version = 11 : i64} {
  func.func @kernel(%arg0: i32, %arg1: i32, %arg2: memref<16x128xf32, #tpu.memory_space<vmem>>, %arg3: memref<1x128xf32, #tpu.memory_space<vmem>>, %arg4: memref<128x384xbf16, #tpu.memory_space<vmem>>, %arg5: memref<16x384xbf16, #tpu.memory_space<vmem>>, %arg6: memref<16x128xbf16, #tpu.memory_space<vmem>>) attributes {dimension_semantics = [#tpu.dimension_semantics<parallel>, #tpu.dimension_semantics<arbitrary>], iteration_bounds = array<i64: 1, 1>, scalar_prefetch = 0 : i64, scratch_operands = 1 : i64, tpu.core_type = #tpu.core_type<tc>, window_params = [{transform_indices = @transform_0, window_bounds = array<i64: 16, 128>}, {pipeline_mode = #tpu.pipeline_mode<synchronous>, transform_indices = @transform_1, window_bounds = array<i64: 1, 128>}, {transform_indices = @transform_2, window_bounds = array<i64: 128, 384>}, {transform_indices = @transform_3, window_bounds = array<i64: 16, 384>}]} {
    %c0_i32 = arith.constant 0 : i32
    %0 = arith.cmpi eq, %arg1, %c0_i32 : i32
    %1 = arith.extui %0 : i1 to i32
    %c0_i32_0 = arith.constant 0 : i32
    %2 = arith.cmpi ne, %1, %c0_i32_0 : i32
    scf.if %2 {
      %c0_6 = arith.constant 0 : index
      %c0_7 = arith.constant 0 : index
      %8 = vector.load %arg2[%c0_6, %c0_7] : memref<16x128xf32, #tpu.memory_space<vmem>>, vector<16x128xf32>
      %9 = arith.mulf %8, %8 : vector<16x128xf32>
      %cst_8 = arith.constant dense<0.000000e+00> : vector<16xf32>
      %10 = vector.multi_reduction <add>, %9, %cst_8 [1] : vector<16x128xf32> to vector<16xf32>
      %11 = vector.shape_cast %10 : vector<16xf32> to vector<16x1xf32>
      %cst_9 = arith.constant 1.280000e+02 : f32
      %12 = vector.broadcast %cst_9 : f32 to vector<16x1xf32>
      %13 = arith.divf %11, %12 : vector<16x1xf32>
      %cst_10 = arith.constant 9.99999997E-7 : f32
      %14 = vector.broadcast %cst_10 : f32 to vector<16x1xf32>
      %15 = arith.addf %13, %14 : vector<16x1xf32>
      %16 = math.rsqrt %15 : vector<16x1xf32>
      %17 = vector.broadcast %16 : vector<16x1xf32> to vector<16x128xf32>
      %18 = arith.mulf %8, %17 : vector<16x128xf32>
      %c0_11 = arith.constant 0 : index
      %c0_12 = arith.constant 0 : index
      %19 = vector.load %arg3[%c0_11, %c0_12] : memref<1x128xf32, #tpu.memory_space<vmem>>, vector<1x128xf32>
      %20 = vector.broadcast %19 : vector<1x128xf32> to vector<16x128xf32>
      %21 = arith.mulf %18, %20 : vector<16x128xf32>
      %22 = arith.truncf %21 : vector<16x128xf32> to vector<16x128xbf16>
      %c0_13 = arith.constant 0 : index
      %c0_14 = arith.constant 0 : index
      %23 = vector.load %arg6[%c0_13, %c0_14] : memref<16x128xbf16, #tpu.memory_space<vmem>>, vector<16x128xbf16>
      tpu.vector_store %arg6[%c0_13, %c0_14], %22 {strides = array<i32>} : memref<16x128xbf16, #tpu.memory_space<vmem>>, vector<16x128xbf16>,
    } else {
    }
    %c0 = arith.constant 0 : index
    %c0_1 = arith.constant 0 : index
    %3 = vector.load %arg6[%c0, %c0_1] : memref<16x128xbf16, #tpu.memory_space<vmem>>, vector<16x128xbf16>
    %c0_2 = arith.constant 0 : index
    %c0_3 = arith.constant 0 : index
    %4 = vector.load %arg4[%c0_2, %c0_3] : memref<128x384xbf16, #tpu.memory_space<vmem>>, vector<128x384xbf16>
    %cst = arith.constant dense<0.000000e+00> : vector<16x384xf32>
    %5 = tpu.matmul %3, %4, %cst {dimension_numbers = #tpu.dot_dimension_numbers<[1], [0], [0], [1], [0, 0, 1, 1], [], []>} : vector<16x128xbf16>, vector<128x384xbf16>, vector<16x384xf32> -> vector<16x384xf32>
    %6 = arith.truncf %5 : vector<16x384xf32> to vector<16x384xbf16>
    %c0_4 = arith.constant 0 : index
    %c0_5 = arith.constant 0 : index
    %7 = vector.load %arg5[%c0_4, %c0_5] : memref<16x384xbf16, #tpu.memory_space<vmem>>, vector<16x384xbf16>
    tpu.vector_store %arg5[%c0_4, %c0_5], %6 {strides = array<i32>} : memref<16x384xbf16, #tpu.memory_space<vmem>>, vector<16x384xbf16>,
    return
  }
  func.func @transform_0(%arg0: i32, %arg1: i32) -> (i32, i32) {
    %c0_i32 = arith.constant 0 : i32
    %c0_i32_0 = arith.constant 0 : i32
    return %arg0, %c0_i32 : i32, i32
  }
  func.func @transform_1(%arg0: i32, %arg1: i32) -> (i32, i32) {
    %c0_i32 = arith.constant 0 : i32
    %c0_i32_0 = arith.constant 0 : i32
    %c0_i32_1 = arith.constant 0 : i32
    return %c0_i32, %c0_i32_0 : i32, i32
  }
  func.func @transform_2(%arg0: i32, %arg1: i32) -> (i32, i32) {
    %c0_i32 = arith.constant 0 : i32
    %c0_i32_0 = arith.constant 0 : i32
    return %c0_i32, %arg1 : i32, i32
  }
  func.func @transform_3(%arg0: i32, %arg1: i32) -> (i32, i32) {
    %c0_i32 = arith.constant 0 : i32
    return %arg0, %arg1 : i32, i32
  }
}

</mosaic_0001>

<bundles_post_ra>
// kernel: tpu_custom_call.1
= control target key start
LH: loop header
LB: loop body
LE: loop exit
PB: predicated region body
PF: predicated region fallthrough
CT: control target
= control target key end

     0   :  { %8 = vsyncpa [#allocation4], 0  ;;  %s637_s0 = inlined_call_operand.hbm [shape: f32[16,128], index: 0, kind: input, shape index: {}]   ;;  %s638_s1 = inlined_call_operand.vmem [shape: f32[1,128], index: 1, kind: input, shape index: {}]   ;;  %s639_s2 = inlined_call_operand.hbm [shape: bf16[128,384], index: 2, kind: input, shape index: {}]   ;;  %s640_s3 = inlined_call_operand.hbm [shape: bf16[16,384], index: 3, kind: output, shape index: {}]  }
   0x1   :  { %9 = vsyncpa [#allocation7], 0 }
   0x2   :  { %10 = vsyncpa [#allocation5], 0  ;;  %s543_s12 = smov [#allocation3]   ;;  %s471_s16 = scalar_lea.hbm %s637_s0, 256 }
   0x3   :  { %s16_s13 = sshll.u32 %s543_s12, 4  ;;  %p472_p0 = scmp.ne.s32.totalorder %s637_s0, %s471_s16  ;;  %s17_s13 = int_to_ptr.vmem [resolvable:$true] %s16_s13 }
   0x4   :  { %p475_p1 = scmp.lt.u32.totalorder %s471_s16, %s637_s0 }
   0x6   :  { %p477_p2 = pnand %p475_p1, %p472_p0 }
   0x8   :  { %480 = shalt.err (!%p477_p2)
}
   0x9   :  { %s481_s21 = scalar_lea.vmem %s17_s13, 256  ;;  %p486_p4 = scmp.lt.s32.totalorder %s17_s13, %s17_s13 }
   0xa   :  { %p482_p3 = scmp.ne.s32.totalorder %s17_s13, %s481_s21  ;;  %p487_p5 = scmp.lt.s32.totalorder %s481_s21, %s481_s21 }
   0xc   :  { %p488_p6 = por %p487_p5, %p486_p4 }
   0xe   :  { %p489_p7 = pnand %p488_p6, %p482_p3 }
  0x10   :  { %492 = shalt.err (!%p489_p7)
}
  0x11   :  { %s544_s22 = smov 128   ;;  %s545_s23 = smov 8  }
  0x12   :  { %22 = dma.hbm_to_vmem [thread:$0]  %s637_s0, 256, %s17_s13, [#allocation4], %s544_s22, %s544_s22, %s545_s23  }
  0x13   :  { %s546_s26 = smov [#allocation6]   ;;  %s493_s30 = scalar_lea.hbm %s639_s2, 3072 }
  0x14   :  { %s30_s27 = sshll.u32 %s546_s26, 4  ;;  %p494_p8 = scmp.ne.s32.totalorder %s639_s2, %s493_s30  ;;  %s31_s27 = int_to_ptr.vmem [resolvable:$true] %s30_s27 }
  0x15   :  { %p497_p9 = scmp.lt.u32.totalorder %s493_s30, %s639_s2 }
  0x17   :  { %p499_p10 = pnand %p497_p9, %p494_p8 }
  0x19   :  { %502 = shalt.err (!%p499_p10)
}
  0x1a   :  { %s503_s8 = scalar_lea.vmem %s31_s27, 3072  ;;  %p508_p12 = scmp.lt.s32.totalorder %s31_s27, %s31_s27 }
  0x1b   :  { %p504_p11 = scmp.ne.s32.totalorder %s31_s27, %s503_s8  ;;  %p509_p13 = scmp.lt.s32.totalorder %s503_s8, %s503_s8 }
  0x1d   :  { %p510_p0 = por %p509_p13, %p508_p12 }
  0x1f   :  { %p511_p1 = pnand %p510_p0, %p504_p11 }
  0x21   :  { %514 = shalt.err (!%p511_p1)
}
  0x22   :  { %s547_s0 = smov 192   ;;  %s548_s9 = smov 12  }
  0x23   :  { %36 = dma.hbm_to_vmem [thread:$0]  %s639_s2, 3072, %s31_s27, [#allocation7], %s547_s0, %s547_s0, %s548_s9  }
  0x24   :  { %537 = dma.done.wait [#allocation4], 256  }
  0x25   :  { %538 = vsyncadd [#allocation4], 4294967040 }
  0x26   :  { %539 = dma.done.wait [#allocation7], 3072  }
  0x27   :  { %540 = vsyncadd [#allocation7], 4294964224  ;;  %v549_v0 = vmov 0.0   ;;  %v601_v1 = vld [vmem:[#allocation3] sm:$0xff]  ;;  %v603_v2 = vld [vmem:[#allocation3 + $0x8] sm:$0xff]  ;;  %v550_v24 = vmov 0  }
  0x28   :  { %405 = vmatprep.subr.bf16.mxu1 %v549_v0  ;;  %v50_v3 = vmul.f32 %v601_v1, %v601_v1  ;;  %v435_v4 = vld [vmem:[#allocation6 + $0x4] ss:$12 sps:$4 sm:$0xff]   ;;  %v437_v5 = vld [vmem:[#allocation6] ss:$12 sps:$4 sm:$0xff]   ;;  %v438_v6 = vld [vmem:[#allocation6 + $0x8] ss:$12 sps:$4 sm:$0xff]   ;;  %v51_v7 = vmul.f32 %v603_v2, %v603_v2  ;;  %269 = vmatprep.mubr.bf16.mxu0 %v550_v24 }
  0x29   :  { %237 = vmatprep.subr.bf16.mxu0 %v435_v4  ;;  %v439_v8 = vld [vmem:[#allocation6 + $0x1c] ss:$12 sps:$4 sm:$0xff]   ;;  %406 = vmatpush3.bf16.msra.mxu1 %v438_v6  ;;  %v441_v9 = vld [vmem:[#allocation6 + $0x18] ss:$12 sps:$4 sm:$0xff]   ;;  %v442_v10 = vld [vmem:[#allocation6 + $0x20] ss:$12 sps:$4 sm:$0xff]  }
  0x2a   :  { %52 = vadd.xlane.f32.xlu0 %v50_v3  ;;  %238 = vmatpush1.bf16.msra.mxu0 %v437_v5  ;;  %v443_v11 = vld [vmem:[#allocation6 + $0x34] ss:$12 sps:$4 sm:$0xff]   ;;  %v445_v12 = vld [vmem:[#allocation6 + $0x30] ss:$12 sps:$4 sm:$0xff]   ;;  %v446_v13 = vld [vmem:[#allocation6 + $0x38] ss:$12 sps:$4 sm:$0xff]  }
  0x2b   :  { %239 = vmatprep.subr.bf16.mxu0 %v439_v8  ;;  %407 = vmatprep.subr.bf16.mxu1 %v549_v0  ;;  %v447_v14 = vld [vmem:[#allocation6 + $0x4c] ss:$12 sps:$4 sm:$0xff]   ;;  %v449_v15 = vld [vmem:[#allocation6 + $0x48] ss:$12 sps:$4 sm:$0xff]   ;;  %v450_v16 = vld [vmem:[#allocation6 + $0x50] ss:$12 sps:$4 sm:$0xff]  }
  0x2c   :  { %v451_v17 = vld [vmem:[#allocation6 + $0x64] ss:$12 sps:$4 sm:$0xff]   ;;  %v453_v18 = vld [vmem:[#allocation6 + $0x60] ss:$12 sps:$4 sm:$0xff]   ;;  %v454_v19 = vld [vmem:[#allocation6 + $0x68] ss:$12 sps:$4 sm:$0xff]  }
  0x2d   :  { %408 = vmatpush3.bf16.msra.mxu1 %v442_v10  ;;  %v455_v20 = vld [vmem:[#allocation6 + $0x7c] ss:$12 sps:$4 sm:$0xff]   ;;  %v457_v21 = vld [vmem:[#allocation6 + $0x78] ss:$12 sps:$4 sm:$0xff]   ;;  %v458_v22 = vld [vmem:[#allocation6 + $0x80] ss:$12 sps:$4 sm:$0xff]  }
  0x2e   :  { %54 = vadd.xlane.f32.xlu0 %v51_v7  ;;  %240 = vmatpush1.bf16.msra.mxu0 %v441_v9  ;;  %v459_v23 = vld [vmem:[#allocation6 + $0x94] ss:$12 sps:$4 sm:$0xff]   ;;  %vm551_vm0 = vmmov 0   ;;  %v461_v25 = vld [vmem:[#allocation6 + $0x90] ss:$12 sps:$4 sm:$0xff]   ;;  %s552_s13 = smov [#allocation8]  }
  0x2f   :  { %409 = vmatprep.subr.bf16.mxu1 %v549_v0  ;;  %241 = vmatprep.subr.bf16.mxu0 %v443_v11  ;;  %v462_v26 = vld [vmem:[#allocation6 + $0x98] ss:$12 sps:$4 sm:$0xff]   ;;  %v465_v28 = vld [vmem:[#allocation6 + $0xa8] ss:$12 sps:$4 sm:$0xff]   ;;  %v466_v29 = vld [vmem:[#allocation6 + $0xb0] ss:$12 sps:$4 sm:$0xff]  }
  0x30   :  { %421 = vmatprep.mubr.msk.bf16.mxu1 %vm551_vm0, %v549_v0  ;;  %v463_v27 = vld [vmem:[#allocation6 + $0xac] ss:$12 sps:$4 sm:$0xff]   ;;  %v363_v39 = vld [vmem:[%s638_s1] ss:$0 sm:$0xff]  ;;  %s350_s14 = sshll.u32 %s552_s13, 4  ;;  %s351_s14 = int_to_ptr.vmem [resolvable:$true] %s350_s14 }
  0x31   :  { %410 = vmatpush3.bf16.msra.mxu1 %v446_v13  ;;  %s515_s1 = scalar_lea.vmem %s351_s14, 384  ;;  %p520_p3 = scmp.lt.s32.totalorder %s351_s14, %s351_s14 }
  0x32   :  { %242 = vmatpush1.bf16.msra.mxu0 %v445_v12  ;;  %411 = vmatprep.subr.bf16.mxu1 %v549_v0  ;;  %p516_p2 = scmp.ne.s32.totalorder %s351_s14, %s515_s1  ;;  %p521_p4 = scmp.lt.s32.totalorder %s515_s1, %s515_s1 }
  0x33   :  { %243 = vmatprep.subr.bf16.mxu0 %v447_v14 }
  0x34   :  { %p522_p5 = por %p521_p4, %p520_p3 }
  0x35   :  { %412 = vmatpush3.bf16.msra.mxu1 %v450_v16 }
  0x36   :  { %244 = vmatpush1.bf16.msra.mxu0 %v449_v15  ;;  %413 = vmatprep.subr.bf16.mxu1 %v549_v0  ;;  %p523_p6 = pnand %p522_p5, %p516_p2 }
  0x37   :  { %245 = vmatprep.subr.bf16.mxu0 %v451_v17 }
  0x39   :  { %414 = vmatpush3.bf16.msra.mxu1 %v454_v19 }
  0x3a   :  { %246 = vmatpush1.bf16.msra.mxu0 %v453_v18  ;;  %415 = vmatprep.subr.bf16.mxu1 %v549_v0 }
  0x3b   :  { %247 = vmatprep.subr.bf16.mxu0 %v455_v20 }
  0x3d   :  { %416 = vmatpush3.bf16.msra.mxu1 %v458_v22 }
  0x3e   :  { %248 = vmatpush1.bf16.msra.mxu0 %v457_v21  ;;  %417 = vmatprep.subr.bf16.mxu1 %v549_v0 }
  0x3f   :  { %249 = vmatprep.subr.bf16.mxu0 %v459_v23 }
  0x41   :  { %418 = vmatpush3.bf16.msra.mxu1 %v462_v26 }
  0x42   :  { %250 = vmatpush1.bf16.msra.mxu0 %v461_v25  ;;  %419 = vmatprep.subr.bf16.mxu1 %v549_v0 }
  0x43   :  { %251 = vmatprep.subr.bf16.mxu0 %v463_v27 }
  0x45   :  { %420 = vmatpush3.bf16.msra.mxu1 %v466_v29 }
  0x46   :  { %252 = vmatpush1.bf16.msra.mxu0 %v465_v28 }
  0xb7   :  { %v53_v30 = vpop.xlane.xlu0 %52 }
  0xb8   :  { %v57_v31 = vmul.f32 0.0078125, %v53_v30 }
  0xba   :  { %v59_v32 = vadd.f32 1e-06, %v57_v31 }
  0xbb   :  { %v55_v33 = vpop.xlane.xlu0 %54 }
  0xbc   :  { %467 = vrsqrt.f32 %v59_v32  ;;  %v58_v34 = vmul.f32 0.0078125, %v55_v33 }
  0xbe   :  { %v60_v35 = vadd.f32 1e-06, %v58_v34 }
  0xc0   :  { %469 = vrsqrt.f32 %v60_v35 }
  0xc6   :  { %v468_v36 = vpop.eup %467 }
  0xc7   :  { %v63_v37 = vmul.f32 %v468_v36, %v601_v1 }
  0xc9   :  { %v72_v41 = vmul.f32 %v363_v39, %v63_v37 }
  0xca   :  { %v470_v38 = vpop.eup %469 }
  0xcb   :  { %v64_v40 = vmul.f32 %v470_v38, %v603_v2 }
  0xcd   :  { %v73_v42 = vmul.f32 %v363_v39, %v64_v40 }
  0xcf   :  { %v74_v43 = vpack.c.bf16 %v73_v42, %v72_v41 }
  0xd1   :  { %270 = vmatmul.mubr.bf16.vlgmr.msra.gmra.mrb[0].mxu0 %v74_v43  ;;  %422 = vmatmul.mubr.bf16.vlgmr.msra.gmra.mrb[0].mxu1 %v74_v43 }
 0x1a4   :  { %v271_v44 = vpop.f32.mrb[0].mxu0  ;;  %v314_v45 = vpop.f32.mrb[0].mxu1 }
 0x1a5   :  { %v393_v46 = vpack.c.bf16 %v314_v45, %v314_v45  ;;  %v273_v47 = vpop.f32.mrb[1].mxu0  ;;  %v423_v48 = vpop.f32.mrb[1].mxu1 }
 0x1a6   :  { %v392_v49 = vpack.c.bf16 %v273_v47, %v271_v44  ;;  %v275_v50 = vpop.f32.mrb[2].mxu0  ;;  %v317_v51 = vpop.f32.mrb[2].mxu1 }
 0x1a7   :  { %342 = vst [vmem:[#allocation8 + $0x8] sm:$0xf] %v393_v46  ;;  %v395_v52 = vpack.c.bf16 %v317_v51, %v317_v51  ;;  %v277_v53 = vpop.f32.mrb[3].mxu0  ;;  %v424_v54 = vpop.f32.mrb[3].mxu1 }
 0x1a8   :  { %341 = vst [vmem:[#allocation8] sm:$0xff] %v392_v49  ;;  %v394_v55 = vpack.c.bf16 %v277_v53, %v275_v50 }
 0x1a9   :  { %344 = vst [vmem:[#allocation8 + $0x14] sm:$0xf] %v395_v52 }
 0x1aa   :  { %343 = vst [vmem:[#allocation8 + $0xc] sm:$0xff] %v394_v55 }
 0x1ab   :  { %526 = shalt.err (!%p523_p6)
}
 0x1ac   :  { %s527_s17 = scalar_lea.hbm %s640_s3, 384 }
 0x1ad   :  { %p528_p7 = scmp.ne.s32.totalorder %s640_s3, %s527_s17  ;;  %p531_p8 = scmp.lt.u32.totalorder %s527_s17, %s640_s3 }
 0x1af   :  { %p533_p9 = pnand %p531_p8, %p528_p7 }
 0x1b1   :  { %536 = shalt.err (!%p533_p9)
}
 0x1b2   :  { %356 = dma.vmem_to_hbm [thread:$0]  %s351_s14, 384, %s640_s3, [#allocation5], %s547_s0, %s547_s0, %s548_s9  }
 0x1b3   :  { %541 = dma.done.wait [#allocation5], 384  }
 0x1b4   :  { %542 = vsyncadd [#allocation5], 4294966912 }
 0x1b5   :  { %360 = vsyncpa [#allocation4], 1 }
 0x1b6   :  { %361 = vsyncpa [#allocation7], 1 }
 0x1b7   :  { %362 = vsyncpa [#allocation5], 1 }

</bundles_post_ra>
